<compile_context>
chip_gen: v7x
topology: tpu7x:2x2x1
jax: 0.10.0
libtpu: 0.0.40
codegen_flags: <defaults>
</compile_context>

<pallas_src>
from functools import partial

import jax
import jax.numpy as jnp
from jax.experimental import pallas as pl
from jax.experimental.pallas import tpu as pltpu

_BN_EPS = 1e-5


def _round_up(x, m):
    return ((x + m - 1) // m) * m


# ----------------------------- Pallas kernels -----------------------------

def _matmul_stats_kernel(p_ref, w_ref, y_ref, stats_ref):
    # p_ref: [tm, K]   w_ref: [K, Cp] (resident)   y_ref: [tm, Cp] f32
    # stats_ref: [1, 2, Cp]  per-tile partial (sum, sum_of_squares) over rows.
    acc = jnp.dot(p_ref[...], w_ref[...], preferred_element_type=jnp.float32)
    y_ref[...] = acc
    s = jnp.sum(acc, axis=0, keepdims=True)           # [1, Cp]
    sq = jnp.sum(acc * acc, axis=0, keepdims=True)    # [1, Cp]
    stats_ref[...] = jnp.concatenate([s, sq], axis=0)[None, :, :]


def _matmul_kernel(p_ref, w_ref, y_ref, *, apply_relu):
    acc = jnp.dot(p_ref[...], w_ref[...], preferred_element_type=jnp.float32)
    if apply_relu:
        acc = jnp.maximum(acc, 0.0)
    y_ref[...] = acc


def _bn_relu_kernel(y_ref, scale_ref, shift_ref, o_ref, *, apply_relu):
    # y_ref/o_ref: [tm, Cp] f32, scale/shift: [1, Cp] resident.
    y = y_ref[...] * scale_ref[...] + shift_ref[...]
    if apply_relu:
        y = jnp.maximum(y, 0.0)
    o_ref[...] = y


# ------------------------------- wrapper ----------------------------------

def _same_pad(k, d):
    # mirrors the module's padding arithmetic for padding='same'
    p = k + (k - 1) * (d - 1)
    return p // 2 + (p % 2 - 1)


@partial(jax.jit, static_argnames=("stride", "dilation", "padding", "bn", "relu",
                                   "compute_dtype", "tm"))
def conv_block_forward(x, weight, gamma, beta, *, stride=(1, 1), dilation=(1, 1),
                       padding='same', bn=True, relu=False,
                       compute_dtype=jnp.bfloat16, tm=512):
    """x: [N, Cin, H, W] float32, weight: [Cout, Cin, kh, kw] float32."""
    # TODO(synk): groups > 1 not supported (module default is groups=1).
    # TODO(synk): BatchNorm is training-mode (batch stats, biased variance);
    #             running-stat / eval-mode behavior is not reproduced.
    N, Cin, H, W = x.shape
    Cout, _, kh, kw = weight.shape

    # Padding arithmetic mirrors the PyTorch module verbatim (including its
    # quirky handling of explicit integer / tuple padding).
    if padding == 'same':
        pad_h = _same_pad(kh, dilation[0])
        pad_w = _same_pad(kw, dilation[1])
    elif padding == 'valid':
        pad_h = pad_w = 0
    else:
        ph = (padding[0] if hasattr(padding, '__iter__') else padding) * 2
        pw = (padding[1] if hasattr(padding, '__iter__') else padding) * 2
        pad_h = ph // 2 + (ph % 2 - 1)
        pad_w = pw // 2 + (pw % 2 - 1)

    # im2col produced directly in [N, Hout, Wout, K] order (no extra transpose
    # pass over HBM).  K is ordered (Cin, kh, kw), matching OIHW flattening.
    # TODO(synk): patch extraction stays an XLA op (not fused into the kernel).
    patches = jax.lax.conv_general_dilated_patches(
        x, filter_shape=(kh, kw), window_strides=stride,
        padding=((pad_h, pad_h), (pad_w, pad_w)), rhs_dilation=dilation,
        dimension_numbers=('NCHW', 'OIHW', 'NHWC'))
    _, Hout, Wout, K = patches.shape
    M = N * Hout * Wout

    # Lane-dense output channels; M padded to a whole number of row tiles.
    Cp = _round_up(Cout, 128)
    tm_eff = tm if M >= tm else max(8, _round_up(M, 8))
    Mp = _round_up(M, tm_eff)
    n_m = Mp // tm_eff

    patches_2d = patches.reshape(M, K).astype(compute_dtype)
    if Mp != M:  # zero rows: contribute nothing to the BN sums, sliced off at the end
        patches_2d = jnp.pad(patches_2d, ((0, Mp - M), (0, 0)))
    w_2d = weight.reshape(Cout, K).T.astype(compute_dtype)          # [K, Cout]
    if Cp != Cout:  # zero columns -> padded channels are exactly zero
        w_2d = jnp.pad(w_2d, ((0, 0), (0, Cp - Cout)))

    p_spec = pl.BlockSpec((tm_eff, K), lambda i: (i, 0))
    w_spec = pl.BlockSpec((K, Cp), lambda i: (0, 0))      # resident weight
    y_spec = pl.BlockSpec((tm_eff, Cp), lambda i: (i, 0))

    itemsize = patches_2d.dtype.itemsize
    cost = pl.CostEstimate(
        flops=2 * Mp * K * Cp,
        transcendentals=0,
        bytes_accessed=Mp * K * itemsize + K * Cp * itemsize + Mp * Cp * 4
                       + (2 * n_m * Cp * 4 if bn else 0))
    cparams = pltpu.CompilerParams(dimension_semantics=("parallel",))

    if bn:
        # ---- pass 1: tiled matmul + per-tile partial BN statistics ----
        y_pad, part = pl.pallas_call(
            _matmul_stats_kernel,
            grid=(n_m,),
            in_specs=[p_spec, w_spec],
            out_specs=[y_spec, pl.BlockSpec((1, 2, Cp), lambda i: (i, 0, 0))],
            out_shape=[jax.ShapeDtypeStruct((Mp, Cp), jnp.float32),
                       jax.ShapeDtypeStruct((n_m, 2, Cp), jnp.float32)],
            compiler_params=cparams,
            cost_estimate=cost,
        )(patches_2d, w_2d)

        # Tiny per-channel reduction + fold into one scale/shift (f32).
        sums = jnp.sum(part, axis=0)                     # [2, Cp]
        mean = sums[0] / M
        var = jnp.maximum(sums[1] / M - mean * mean, 0.0)   # biased variance
        g = jnp.pad(gamma.astype(jnp.float32), (0, Cp - Cout))
        b = jnp.pad(beta.astype(jnp.float32), (0, Cp - Cout))
        scale = g * jax.lax.rsqrt(var + _BN_EPS)
        shift = b - mean * scale

        # ---- pass 2: in-place normalize + affine + ReLU (mem-bound) ----
        y_2d = pl.pallas_call(
            partial(_bn_relu_kernel, apply_relu=relu),
            grid=(n_m,),
            in_specs=[y_spec,
                      pl.BlockSpec((1, Cp), lambda i: (0, 0)),
                      pl.BlockSpec((1, Cp), lambda i: (0, 0))],
            out_specs=y_spec,
            out_shape=jax.ShapeDtypeStruct((Mp, Cp), jnp.float32),
            input_output_aliases={0: 0},
            compiler_params=cparams,
        )(y_pad, scale.reshape(1, Cp), shift.reshape(1, Cp))
    else:
        y_2d = pl.pallas_call(
            partial(_matmul_kernel, apply_relu=relu),
            grid=(n_m,),
            in_specs=[p_spec, w_spec],
            out_specs=y_spec,
            out_shape=jax.ShapeDtypeStruct((Mp, Cp), jnp.float32),
            compiler_params=cparams,
            cost_estimate=cost,
        )(patches_2d, w_2d)

    y = y_2d[:M, :Cout].reshape(N, Hout, Wout, Cout)
    return jnp.transpose(y, (0, 3, 1, 2))               # back to NCHW


# ------------------------------ reference ---------------------------------

def _reference(x, weight, gamma, beta, *, stride, dilation, pad_h, pad_w, bn, relu):
    y = jax.lax.conv_general_dilated(
        x, weight, window_strides=stride,
        padding=((pad_h, pad_h), (pad_w, pad_w)), rhs_dilation=dilation,
        dimension_numbers=('NCHW', 'OIHW', 'NCHW'))
    if bn:
        mean = jnp.mean(y, axis=(0, 2, 3), keepdims=True)
        var = jnp.mean((y - mean) ** 2, axis=(0, 2, 3), keepdims=True)
        y = (y - mean) * jax.lax.rsqrt(var + _BN_EPS)
        y = y * gamma[None, :, None, None] + beta[None, :, None, None]
    if relu:
        y = jnp.maximum(y, 0.0)
    return y


if __name__ == "__main__":
    key = jax.random.PRNGKey(0)
    kx, kw_key = jax.random.split(key)

    # small shapes consistent with the module
    N, Cin, H, W = 2, 4, 16, 16
    Cout, kh, kw_sz = 8, 3, 3
    stride, dilation = (1, 1), (1, 1)
    use_bn, use_relu = True, True

    x = jax.random.normal(kx, (N, Cin, H, W), dtype=jnp.float32)

    # conv weight: kaiming_normal_ (fan_in, gain=sqrt(2)) -> std = sqrt(2/fan_in)
    fan_in = Cin * kh * kw_sz
    weight = jax.random.normal(kw_key, (Cout, Cin, kh, kw_sz), dtype=jnp.float32) * jnp.sqrt(2.0 / fan_in)

    # BatchNorm2d default init: weight=1, bias=0
    gamma = jnp.ones((Cout,), dtype=jnp.float32)
    beta = jnp.zeros((Cout,), dtype=jnp.float32)

    pad_h = _same_pad(kh, dilation[0])
    pad_w = _same_pad(kw_sz, dilation[1])
    ref = _reference(x, weight, gamma, beta, stride=stride, dilation=dilation,
                     pad_h=pad_h, pad_w=pad_w, bn=use_bn, relu=use_relu)

    # f32 MXU path: tight check against the XLA reference.
    out_f32 = conv_block_forward(x, weight, gamma, beta, stride=stride, dilation=dilation,
                                 padding='same', bn=use_bn, relu=use_relu,
                                 compute_dtype=jnp.float32)
    out_f32 = jax.block_until_ready(out_f32)
    assert out_f32.shape == ref.shape, (out_f32.shape, ref.shape)
    assert jnp.allclose(out_f32, ref, atol=2e-4, rtol=2e-4), float(jnp.max(jnp.abs(out_f32 - ref)))

    # bf16 MXU path (default perf configuration, f32 accumulation): compare
    # against the reference evaluated with bf16-rounded inputs.
    x_b = x.astype(jnp.bfloat16).astype(jnp.float32)
    w_b = weight.astype(jnp.bfloat16).astype(jnp.float32)
    ref_b = _reference(x_b, w_b, gamma, beta, stride=stride, dilation=dilation,
                       pad_h=pad_h, pad_w=pad_w, bn=use_bn, relu=use_relu)
    out_bf16 = conv_block_forward(x, weight, gamma, beta, stride=stride, dilation=dilation,
                                  padding='same', bn=use_bn, relu=use_relu,
                                  compute_dtype=jnp.bfloat16)
    out_bf16 = jax.block_until_ready(out_bf16)
    assert jnp.allclose(out_bf16, ref_b, atol=2e-3, rtol=2e-3), float(jnp.max(jnp.abs(out_bf16 - ref_b)))

    print("KERNEL_OK")
</pallas_src>

<mosaic_0001>
module attributes {stable_mosaic.version = 11 : i64} {
  func.func @_matmul_stats_kernel(%arg0: i32, %arg1: memref<512x36xf32, #tpu.memory_space<vmem>>, %arg2: memref<36x128xf32, #tpu.memory_space<vmem>>, %arg3: memref<512x128xf32, #tpu.memory_space<vmem>>, %arg4: memref<1x2x128xf32, #tpu.memory_space<vmem>>) attributes {dimension_semantics = [#tpu.dimension_semantics<parallel>], iteration_bounds = array<i64: 1>, scalar_prefetch = 0 : i64, scratch_operands = 0 : i64, tpu.core_type = #tpu.core_type<tc>, window_params = [{transform_indices = @transform_0, window_bounds = array<i64: 512, 36>}, {pipeline_mode = #tpu.pipeline_mode<synchronous>, transform_indices = @transform_1, window_bounds = array<i64: 36, 128>}, {transform_indices = @transform_2, window_bounds = array<i64: 512, 128>}, {transform_indices = @transform_3, window_bounds = array<i64: 1, 2, 128>}]} {
    %c0 = arith.constant 0 : index
    %c0_0 = arith.constant 0 : index
    %0 = vector.load %arg1[%c0, %c0_0] : memref<512x36xf32, #tpu.memory_space<vmem>>, vector<512x36xf32>
    %c0_1 = arith.constant 0 : index
    %c0_2 = arith.constant 0 : index
    %1 = vector.load %arg2[%c0_1, %c0_2] : memref<36x128xf32, #tpu.memory_space<vmem>>, vector<36x128xf32>
    %cst = arith.constant dense<0.000000e+00> : vector<512x128xf32>
    %2 = tpu.matmul %0, %1, %cst {dimension_numbers = #tpu.dot_dimension_numbers<[1], [0], [0], [1], [0, 0, 1, 1], [], []>} : vector<512x36xf32>, vector<36x128xf32>, vector<512x128xf32> -> vector<512x128xf32>
    %c0_3 = arith.constant 0 : index
    %c0_4 = arith.constant 0 : index
    %3 = vector.load %arg3[%c0_3, %c0_4] : memref<512x128xf32, #tpu.memory_space<vmem>>, vector<512x128xf32>
    tpu.vector_store %arg3[%c0_3, %c0_4], %2 {strides = array<i32>} : memref<512x128xf32, #tpu.memory_space<vmem>>, vector<512x128xf32>,
    %cst_5 = arith.constant dense<0.000000e+00> : vector<128xf32>
    %4 = vector.multi_reduction <add>, %2, %cst_5 [0] : vector<512x128xf32> to vector<128xf32>
    %5 = vector.shape_cast %4 : vector<128xf32> to vector<1x128xf32>
    %6 = arith.mulf %2, %2 : vector<512x128xf32>
    %cst_6 = arith.constant dense<0.000000e+00> : vector<128xf32>
    %7 = vector.multi_reduction <add>, %6, %cst_6 [0] : vector<512x128xf32> to vector<128xf32>
    %8 = vector.shape_cast %7 : vector<128xf32> to vector<1x128xf32>
    %9 = tpu.concatenate %5, %8 in 0 : vector<1x128xf32>, vector<1x128xf32> -> vector<2x128xf32>
    %10 = vector.shape_cast %9 : vector<2x128xf32> to vector<1x2x128xf32>
    %c0_7 = arith.constant 0 : index
    %c0_8 = arith.constant 0 : index
    %c0_9 = arith.constant 0 : index
    %11 = vector.load %arg4[%c0_7, %c0_8, %c0_9] : memref<1x2x128xf32, #tpu.memory_space<vmem>>, vector<1x2x128xf32>
    tpu.vector_store %arg4[%c0_7, %c0_8, %c0_9], %10 {strides = array<i32>} : memref<1x2x128xf32, #tpu.memory_space<vmem>>, vector<1x2x128xf32>,
    return
  }
  func.func @transform_0(%arg0: i32) -> (i32, i32) {
    %c0_i32 = arith.constant 0 : i32
    %c0_i32_0 = arith.constant 0 : i32
    return %arg0, %c0_i32 : i32, i32
  }
  func.func @transform_1(%arg0: i32) -> (i32, i32) {
    %c0_i32 = arith.constant 0 : i32
    %c0_i32_0 = arith.constant 0 : i32
    %c0_i32_1 = arith.constant 0 : i32
    return %c0_i32, %c0_i32_0 : i32, i32
  }
  func.func @transform_2(%arg0: i32) -> (i32, i32) {
    %c0_i32 = arith.constant 0 : i32
    %c0_i32_0 = arith.constant 0 : i32
    return %arg0, %c0_i32 : i32, i32
  }
  func.func @transform_3(%arg0: i32) -> (i32, i32, i32) {
    %c0_i32 = arith.constant 0 : i32
    %c0_i32_0 = arith.constant 0 : i32
    %c0_i32_1 = arith.constant 0 : i32
    return %arg0, %c0_i32, %c0_i32_0 : i32, i32, i32
  }
}

module attributes {stable_mosaic.version = 11 : i64} {
  func.func @_bn_relu_kernel(%arg0: i32, %arg1: memref<512x128xf32, #tpu.memory_space<vmem>>, %arg2: memref<1x128xf32, #tpu.memory_space<vmem>>, %arg3: memref<1x128xf32, #tpu.memory_space<vmem>>, %arg4: memref<512x128xf32, #tpu.memory_space<vmem>>) attributes {dimension_semantics = [#tpu.dimension_semantics<parallel>], iteration_bounds = array<i64: 1>, scalar_prefetch = 0 : i64, scratch_operands = 0 : i64, tpu.core_type = #tpu.core_type<tc>, window_params = [{transform_indices = @transform_0, window_bounds = array<i64: 512, 128>}, {pipeline_mode = #tpu.pipeline_mode<synchronous>, transform_indices = @transform_1, window_bounds = array<i64: 1, 128>}, {pipeline_mode = #tpu.pipeline_mode<synchronous>, transform_indices = @transform_2, window_bounds = array<i64: 1, 128>}, {transform_indices = @transform_3, window_bounds = array<i64: 512, 128>}]} {
    %c0 = arith.constant 0 : index
    %c0_0 = arith.constant 0 : index
    %0 = vector.load %arg1[%c0, %c0_0] : memref<512x128xf32, #tpu.memory_space<vmem>>, vector<512x128xf32>
    %c0_1 = arith.constant 0 : index
    %c0_2 = arith.constant 0 : index
    %1 = vector.load %arg2[%c0_1, %c0_2] : memref<1x128xf32, #tpu.memory_space<vmem>>, vector<1x128xf32>
    %2 = vector.broadcast %1 : vector<1x128xf32> to vector<512x128xf32>
    %3 = arith.mulf %0, %2 : vector<512x128xf32>
    %c0_3 = arith.constant 0 : index
    %c0_4 = arith.constant 0 : index
    %4 = vector.load %arg3[%c0_3, %c0_4] : memref<1x128xf32, #tpu.memory_space<vmem>>, vector<1x128xf32>
    %5 = vector.broadcast %4 : vector<1x128xf32> to vector<512x128xf32>
    %6 = arith.addf %3, %5 : vector<512x128xf32>
    %cst = arith.constant 0.000000e+00 : f32
    %7 = vector.broadcast %cst : f32 to vector<512x128xf32>
    %8 = arith.maximumf %6, %7 : vector<512x128xf32>
    %c0_5 = arith.constant 0 : index
    %c0_6 = arith.constant 0 : index
    %9 = vector.load %arg4[%c0_5, %c0_6] : memref<512x128xf32, #tpu.memory_space<vmem>>, vector<512x128xf32>
    tpu.vector_store %arg4[%c0_5, %c0_6], %8 {strides = array<i32>} : memref<512x128xf32, #tpu.memory_space<vmem>>, vector<512x128xf32>,
    return
  }
  func.func @transform_0(%arg0: i32) -> (i32, i32) {
    %c0_i32 = arith.constant 0 : i32
    %c0_i32_0 = arith.constant 0 : i32
    return %arg0, %c0_i32 : i32, i32
  }
  func.func @transform_1(%arg0: i32) -> (i32, i32) {
    %c0_i32 = arith.constant 0 : i32
    %c0_i32_0 = arith.constant 0 : i32
    %c0_i32_1 = arith.constant 0 : i32
    return %c0_i32, %c0_i32_0 : i32, i32
  }
  func.func @transform_2(%arg0: i32) -> (i32, i32) {
    %c0_i32 = arith.constant 0 : i32
    %c0_i32_0 = arith.constant 0 : i32
    %c0_i32_1 = arith.constant 0 : i32
    return %c0_i32, %c0_i32_0 : i32, i32
  }
  func.func @transform_3(%arg0: i32) -> (i32, i32) {
    %c0_i32 = arith.constant 0 : i32
    %c0_i32_0 = arith.constant 0 : i32
    return %arg0, %c0_i32 : i32, i32
  }
}

</mosaic_0001>

<bundles_post_ra>
// kernel: conv_block_forward.3
= control target key start
LH: loop header
LB: loop body
LE: loop exit
PB: predicated region body
PF: predicated region fallthrough
CT: control target
= control target key end

     0   :  { %s896_s0 = inlined_call_operand.vmem [shape: f32[512,128], index: 0, kind: input, shape index: {}, may-alias: {0,3}]   ;;  %s897_s1 = inlined_call_operand.vmem [shape: f32[1,128], index: 1, kind: input, shape index: {}]   ;;  %s898_s2 = inlined_call_operand.vmem [shape: f32[1,128], index: 2, kind: input, shape index: {}]   ;;  %s899_s3 = inlined_call_operand.vmem [shape: f32[512,128], index: 3, kind: output, shape index: {}, may-alias: {0,3}]  }
   0x1   :  { %v14_v0 = vld [vmem:[%s896_s0] sm:$0xff]  ;;  %v15_v4 = vld [vmem:[%s896_s0 + $0x8] sm:$0xff]  ;;  %v16_v5 = vld [vmem:[%s896_s0 + $0x10] sm:$0xff] }
   0x2   :  { %v380_v1 = vld [vmem:[%s897_s1] ss:$0 sm:$0xff]  ;;  %v17_v6 = vld [vmem:[%s896_s0 + $0x18] sm:$0xff]  ;;  %v19_v11 = vld [vmem:[%s896_s0 + $0x28] sm:$0xff] }
   0x3   :  { %v385_v2 = vld [vmem:[%s898_s2] ss:$0 sm:$0xff]  ;;  %v85_v3 = vmul.f32 %v380_v1, %v14_v0  ;;  %v86_v7 = vmul.f32 %v380_v1, %v15_v4  ;;  %v87_v8 = vmul.f32 %v380_v1, %v16_v5  ;;  %v88_v9 = vmul.f32 %v380_v1, %v17_v6  ;;  %v20_v12 = vld [vmem:[%s896_s0 + $0x30] sm:$0xff]  ;;  %v21_v17 = vld [vmem:[%s896_s0 + $0x38] sm:$0xff] }
   0x4   :  { %v18_v10 = vld [vmem:[%s896_s0 + $0x20] sm:$0xff]  ;;  %v90_v15 = vmul.f32 %v380_v1, %v19_v11  ;;  %v91_v16 = vmul.f32 %v380_v1, %v20_v12  ;;  %v92_v21 = vmul.f32 %v380_v1, %v21_v17  ;;  %v23_v27 = vld [vmem:[%s896_s0 + $0x48] sm:$0xff]  ;;  %v24_v28 = vld [vmem:[%s896_s0 + $0x50] sm:$0xff] }
   0x5   :  { %v156_v13 = vadd.f32 %v385_v2, %v85_v3  ;;  %v89_v14 = vmul.f32 %v380_v1, %v18_v10  ;;  %v157_v18 = vadd.f32 %v385_v2, %v86_v7  ;;  %v158_v19 = vadd.f32 %v385_v2, %v87_v8  ;;  %v22_v22 = vld [vmem:[%s896_s0 + $0x40] sm:$0xff]  ;;  %v25_v29 = vld [vmem:[%s896_s0 + $0x58] sm:$0xff]  ;;  %v27_v35 = vld [vmem:[%s896_s0 + $0x68] sm:$0xff] }
   0x6   :  { %v159_v20 = vadd.f32 %v385_v2, %v88_v9  ;;  %v161_v25 = vadd.f32 %v385_v2, %v90_v15  ;;  %v162_v26 = vadd.f32 %v385_v2, %v91_v16  ;;  %v163_v33 = vadd.f32 %v385_v2, %v92_v21  ;;  %v26_v34 = vld [vmem:[%s896_s0 + $0x60] sm:$0xff]  ;;  %v28_v36 = vld [vmem:[%s896_s0 + $0x70] sm:$0xff] }
   0x7   :  { %v220_v23 = vmax.f32 %v156_v13, 0.0  ;;  %v160_v24 = vadd.f32 %v385_v2, %v89_v14  ;;  %v221_v30 = vmax.f32 %v157_v18, 0.0  ;;  %v222_v31 = vmax.f32 %v158_v19, 0.0 }
   0x8   :  { %v223_v32 = vmax.f32 %v159_v20, 0.0  ;;  %v225_v38 = vmax.f32 %v161_v25, 0.0  ;;  %v226_v39 = vmax.f32 %v162_v26, 0.0  ;;  %v93_v40 = vmul.f32 %v380_v1, %v22_v22 }
   0x9   :  { %284 = vst [vmem:[%s899_s3] sm:$0xff] %v220_v23  ;;  %v224_v37 = vmax.f32 %v160_v24, 0.0  ;;  %v227_v42 = vmax.f32 %v163_v33, 0.0  ;;  %v94_v43 = vmul.f32 %v380_v1, %v23_v27  ;;  %v95_v44 = vmul.f32 %v380_v1, %v24_v28 }
   0xa   :  { %v96_v45 = vmul.f32 %v380_v1, %v25_v29  ;;  %v164_v46 = vadd.f32 %v385_v2, %v93_v40  ;;  %v97_v47 = vmul.f32 %v380_v1, %v26_v34  ;;  %v98_v48 = vmul.f32 %v380_v1, %v27_v35 }
   0xb   :  { %v99_v49 = vmul.f32 %v380_v1, %v28_v36  ;;  %v165_v50 = vadd.f32 %v385_v2, %v94_v43  ;;  %v166_v51 = vadd.f32 %v385_v2, %v95_v44 }
   0xc   :  { %v167_v52 = vadd.f32 %v385_v2, %v96_v45  ;;  %v228_v55 = vmax.f32 %v164_v46, 0.0  ;;  %v168_v56 = vadd.f32 %v385_v2, %v97_v47  ;;  %v169_v57 = vadd.f32 %v385_v2, %v98_v48 }
   0xd   :  { %v170_v58 = vadd.f32 %v385_v2, %v99_v49  ;;  %v229_v62 = vmax.f32 %v165_v50, 0.0  ;;  %v230_v63 = vmax.f32 %v166_v51, 0.0 }
   0xe   :  { %v231_v0 = vmax.f32 %v167_v52, 0.0  ;;  %v232_v7 = vmax.f32 %v168_v56, 0.0  ;;  %v233_v8 = vmax.f32 %v169_v57, 0.0 }
   0xf   :  { %v234_v9 = vmax.f32 %v170_v58, 0.0 }
  0x10   :  { %v29_v41 = vld [vmem:[%s896_s0 + $0x78] sm:$0xff] }
  0x11   :  { %285 = vst [vmem:[%s899_s3 + $0x8] sm:$0xff] %v221_v30  ;;  %286 = vst [vmem:[%s899_s3 + $0x10] sm:$0xff] %v222_v31  ;;  %v100_v53 = vmul.f32 %v380_v1, %v29_v41 }
  0x12   :  { %287 = vst [vmem:[%s899_s3 + $0x18] sm:$0xff] %v223_v32  ;;  %288 = vst [vmem:[%s899_s3 + $0x20] sm:$0xff] %v224_v37 }
  0x13   :  { %289 = vst [vmem:[%s899_s3 + $0x28] sm:$0xff] %v225_v38  ;;  %290 = vst [vmem:[%s899_s3 + $0x30] sm:$0xff] %v226_v39  ;;  %v171_v3 = vadd.f32 %v385_v2, %v100_v53 }
  0x14   :  { %291 = vst [vmem:[%s899_s3 + $0x38] sm:$0xff] %v227_v42 }
  0x15   :  { %v235_v12 = vmax.f32 %v171_v3, 0.0 }
  0x1b   :  { %v30_v54 = vld [vmem:[%s896_s0 + $0x80] sm:$0xff]  ;;  %v31_v59 = vld [vmem:[%s896_s0 + $0x88] sm:$0xff]  ;;  %v32_v60 = vld [vmem:[%s896_s0 + $0x90] sm:$0xff] }
  0x1c   :  { %v33_v61 = vld [vmem:[%s896_s0 + $0x98] sm:$0xff]  ;;  %v34_v4 = vld [vmem:[%s896_s0 + $0xa0] sm:$0xff]  ;;  %v35_v5 = vld [vmem:[%s896_s0 + $0xa8] sm:$0xff]  ;;  %v101_v10 = vmul.f32 %v380_v1, %v30_v54  ;;  %v102_v13 = vmul.f32 %v380_v1, %v31_v59  ;;  %v103_v14 = vmul.f32 %v380_v1, %v32_v60 }
  0x1d   :  { %v36_v6 = vld [vmem:[%s896_s0 + $0xb0] sm:$0xff]  ;;  %v104_v15 = vmul.f32 %v380_v1, %v33_v61  ;;  %v105_v17 = vmul.f32 %v380_v1, %v34_v4  ;;  %v106_v18 = vmul.f32 %v380_v1, %v35_v5 }
  0x1e   :  { %292 = vst [vmem:[%s899_s3 + $0x40] sm:$0xff] %v228_v55  ;;  %v172_v16 = vadd.f32 %v385_v2, %v101_v10  ;;  %v107_v19 = vmul.f32 %v380_v1, %v36_v6  ;;  %v173_v20 = vadd.f32 %v385_v2, %v102_v13  ;;  %v174_v21 = vadd.f32 %v385_v2, %v103_v14 }
  0x1f   :  { %v175_v22 = vadd.f32 %v385_v2, %v104_v15  ;;  %v176_v26 = vadd.f32 %v385_v2, %v105_v17  ;;  %v177_v27 = vadd.f32 %v385_v2, %v106_v18 }
  0x20   :  { %v236_v25 = vmax.f32 %v172_v16, 0.0  ;;  %v178_v28 = vadd.f32 %v385_v2, %v107_v19  ;;  %v237_v32 = vmax.f32 %v173_v20, 0.0  ;;  %v238_v33 = vmax.f32 %v174_v21, 0.0 }
  0x21   :  { %v239_v34 = vmax.f32 %v175_v22, 0.0  ;;  %v240_v39 = vmax.f32 %v176_v26, 0.0  ;;  %v241_v40 = vmax.f32 %v177_v27, 0.0 }
  0x22   :  { %v242_v41 = vmax.f32 %v178_v28, 0.0 }
  0x25   :  { %v37_v11 = vld [vmem:[%s896_s0 + $0xb8] sm:$0xff] }
  0x26   :  { %293 = vst [vmem:[%s899_s3 + $0x48] sm:$0xff] %v229_v62  ;;  %294 = vst [vmem:[%s899_s3 + $0x50] sm:$0xff] %v230_v63  ;;  %v108_v23 = vmul.f32 %v380_v1, %v37_v11 }
  0x27   :  { %295 = vst [vmem:[%s899_s3 + $0x58] sm:$0xff] %v231_v0  ;;  %296 = vst [vmem:[%s899_s3 + $0x60] sm:$0xff] %v232_v7 }
  0x28   :  { %297 = vst [vmem:[%s899_s3 + $0x68] sm:$0xff] %v233_v8  ;;  %298 = vst [vmem:[%s899_s3 + $0x70] sm:$0xff] %v234_v9  ;;  %v179_v35 = vadd.f32 %v385_v2, %v108_v23 }
  0x29   :  { %299 = vst [vmem:[%s899_s3 + $0x78] sm:$0xff] %v235_v12 }
  0x2a   :  { %v243_v44 = vmax.f32 %v179_v35, 0.0 }
  0x30   :  { %v38_v24 = vld [vmem:[%s896_s0 + $0xc0] sm:$0xff]  ;;  %v39_v29 = vld [vmem:[%s896_s0 + $0xc8] sm:$0xff]  ;;  %v40_v30 = vld [vmem:[%s896_s0 + $0xd0] sm:$0xff] }
  0x31   :  { %v41_v31 = vld [vmem:[%s896_s0 + $0xd8] sm:$0xff]  ;;  %v42_v36 = vld [vmem:[%s896_s0 + $0xe0] sm:$0xff]  ;;  %v43_v37 = vld [vmem:[%s896_s0 + $0xe8] sm:$0xff]  ;;  %v109_v42 = vmul.f32 %v380_v1, %v38_v24  ;;  %v110_v45 = vmul.f32 %v380_v1, %v39_v29  ;;  %v111_v46 = vmul.f32 %v380_v1, %v40_v30 }
  0x32   :  { %v44_v38 = vld [vmem:[%s896_s0 + $0xf0] sm:$0xff]  ;;  %v112_v47 = vmul.f32 %v380_v1, %v41_v31  ;;  %v113_v49 = vmul.f32 %v380_v1, %v42_v36  ;;  %v114_v50 = vmul.f32 %v380_v1, %v43_v37 }
  0x33   :  { %300 = vst [vmem:[%s899_s3 + $0x80] sm:$0xff] %v236_v25  ;;  %v180_v48 = vadd.f32 %v385_v2, %v109_v42  ;;  %v115_v51 = vmul.f32 %v380_v1, %v44_v38  ;;  %v181_v52 = vadd.f32 %v385_v2, %v110_v45  ;;  %v182_v53 = vadd.f32 %v385_v2, %v111_v46 }
  0x34   :  { %v183_v54 = vadd.f32 %v385_v2, %v112_v47  ;;  %v184_v58 = vadd.f32 %v385_v2, %v113_v49  ;;  %v185_v59 = vadd.f32 %v385_v2, %v114_v50 }
  0x35   :  { %v244_v57 = vmax.f32 %v180_v48, 0.0  ;;  %v186_v60 = vadd.f32 %v385_v2, %v115_v51  ;;  %v245_v0 = vmax.f32 %v181_v52, 0.0  ;;  %v246_v3 = vmax.f32 %v182_v53, 0.0 }
  0x36   :  { %v247_v4 = vmax.f32 %v183_v54, 0.0  ;;  %v248_v9 = vmax.f32 %v184_v58, 0.0  ;;  %v249_v10 = vmax.f32 %v185_v59, 0.0 }
  0x37   :  { %v250_v11 = vmax.f32 %v186_v60, 0.0 }
  0x3a   :  { %v45_v43 = vld [vmem:[%s896_s0 + $0xf8] sm:$0xff] }
  0x3b   :  { %301 = vst [vmem:[%s899_s3 + $0x88] sm:$0xff] %v237_v32  ;;  %302 = vst [vmem:[%s899_s3 + $0x90] sm:$0xff] %v238_v33  ;;  %v116_v55 = vmul.f32 %v380_v1, %v45_v43 }
  0x3c   :  { %303 = vst [vmem:[%s899_s3 + $0x98] sm:$0xff] %v239_v34  ;;  %304 = vst [vmem:[%s899_s3 + $0xa0] sm:$0xff] %v240_v39 }
  0x3d   :  { %305 = vst [vmem:[%s899_s3 + $0xa8] sm:$0xff] %v241_v40  ;;  %306 = vst [vmem:[%s899_s3 + $0xb0] sm:$0xff] %v242_v41  ;;  %v187_v5 = vadd.f32 %v385_v2, %v116_v55 }
  0x3e   :  { %307 = vst [vmem:[%s899_s3 + $0xb8] sm:$0xff] %v243_v44 }
  0x3f   :  { %v251_v14 = vmax.f32 %v187_v5, 0.0 }
  0x45   :  { %v46_v56 = vld [vmem:[%s896_s0 + $0x100] sm:$0xff]  ;;  %v47_v61 = vld [vmem:[%s896_s0 + $0x108] sm:$0xff]  ;;  %v48_v62 = vld [vmem:[%s896_s0 + $0x110] sm:$0xff] }
  0x46   :  { %v49_v63 = vld [vmem:[%s896_s0 + $0x118] sm:$0xff]  ;;  %v50_v6 = vld [vmem:[%s896_s0 + $0x120] sm:$0xff]  ;;  %v51_v7 = vld [vmem:[%s896_s0 + $0x128] sm:$0xff]  ;;  %v117_v12 = vmul.f32 %v380_v1, %v46_v56  ;;  %v118_v15 = vmul.f32 %v380_v1, %v47_v61  ;;  %v119_v16 = vmul.f32 %v380_v1, %v48_v62 }
  0x47   :  { %v52_v8 = vld [vmem:[%s896_s0 + $0x130] sm:$0xff]  ;;  %v120_v17 = vmul.f32 %v380_v1, %v49_v63  ;;  %v121_v19 = vmul.f32 %v380_v1, %v50_v6  ;;  %v122_v20 = vmul.f32 %v380_v1, %v51_v7 }
  0x48   :  { %308 = vst [vmem:[%s899_s3 + $0xc0] sm:$0xff] %v244_v57  ;;  %v188_v18 = vadd.f32 %v385_v2, %v117_v12  ;;  %v123_v21 = vmul.f32 %v380_v1, %v52_v8  ;;  %v189_v22 = vadd.f32 %v385_v2, %v118_v15  ;;  %v190_v23 = vadd.f32 %v385_v2, %v119_v16 }
  0x49   :  { %v191_v24 = vadd.f32 %v385_v2, %v120_v17  ;;  %v192_v28 = vadd.f32 %v385_v2, %v121_v19  ;;  %v193_v29 = vadd.f32 %v385_v2, %v122_v20 }
  0x4a   :  { %v252_v27 = vmax.f32 %v188_v18, 0.0  ;;  %v194_v30 = vadd.f32 %v385_v2, %v123_v21  ;;  %v253_v34 = vmax.f32 %v189_v22, 0.0  ;;  %v254_v35 = vmax.f32 %v190_v23, 0.0 }
  0x4b   :  { %v255_v36 = vmax.f32 %v191_v24, 0.0  ;;  %v256_v41 = vmax.f32 %v192_v28, 0.0  ;;  %v257_v42 = vmax.f32 %v193_v29, 0.0 }
  0x4c   :  { %v258_v43 = vmax.f32 %v194_v30, 0.0 }
  0x4f   :  { %v53_v13 = vld [vmem:[%s896_s0 + $0x138] sm:$0xff] }
  0x50   :  { %309 = vst [vmem:[%s899_s3 + $0xc8] sm:$0xff] %v245_v0  ;;  %310 = vst [vmem:[%s899_s3 + $0xd0] sm:$0xff] %v246_v3  ;;  %v124_v25 = vmul.f32 %v380_v1, %v53_v13 }
  0x51   :  { %311 = vst [vmem:[%s899_s3 + $0xd8] sm:$0xff] %v247_v4  ;;  %312 = vst [vmem:[%s899_s3 + $0xe0] sm:$0xff] %v248_v9 }
  0x52   :  { %313 = vst [vmem:[%s899_s3 + $0xe8] sm:$0xff] %v249_v10  ;;  %314 = vst [vmem:[%s899_s3 + $0xf0] sm:$0xff] %v250_v11  ;;  %v195_v37 = vadd.f32 %v385_v2, %v124_v25 }
  0x53   :  { %315 = vst [vmem:[%s899_s3 + $0xf8] sm:$0xff] %v251_v14 }
  0x54   :  { %v259_v46 = vmax.f32 %v195_v37, 0.0 }
  0x5a   :  { %v54_v26 = vld [vmem:[%s896_s0 + $0x140] sm:$0xff]  ;;  %v55_v31 = vld [vmem:[%s896_s0 + $0x148] sm:$0xff]  ;;  %v56_v32 = vld [vmem:[%s896_s0 + $0x150] sm:$0xff] }
  0x5b   :  { %v57_v33 = vld [vmem:[%s896_s0 + $0x158] sm:$0xff]  ;;  %v58_v38 = vld [vmem:[%s896_s0 + $0x160] sm:$0xff]  ;;  %v59_v39 = vld [vmem:[%s896_s0 + $0x168] sm:$0xff]  ;;  %v125_v44 = vmul.f32 %v380_v1, %v54_v26  ;;  %v126_v47 = vmul.f32 %v380_v1, %v55_v31  ;;  %v127_v48 = vmul.f32 %v380_v1, %v56_v32 }
  0x5c   :  { %v60_v40 = vld [vmem:[%s896_s0 + $0x170] sm:$0xff]  ;;  %v128_v49 = vmul.f32 %v380_v1, %v57_v33  ;;  %v129_v51 = vmul.f32 %v380_v1, %v58_v38  ;;  %v130_v52 = vmul.f32 %v380_v1, %v59_v39 }
  0x5d   :  { %316 = vst [vmem:[%s899_s3 + $0x100] sm:$0xff] %v252_v27  ;;  %v196_v50 = vadd.f32 %v385_v2, %v125_v44  ;;  %v131_v53 = vmul.f32 %v380_v1, %v60_v40  ;;  %v197_v54 = vadd.f32 %v385_v2, %v126_v47  ;;  %v198_v55 = vadd.f32 %v385_v2, %v127_v48 }
  0x5e   :  { %v199_v56 = vadd.f32 %v385_v2, %v128_v49  ;;  %v200_v60 = vadd.f32 %v385_v2, %v129_v51  ;;  %v201_v61 = vadd.f32 %v385_v2, %v130_v52 }
  0x5f   :  { %v260_v59 = vmax.f32 %v196_v50, 0.0  ;;  %v202_v62 = vadd.f32 %v385_v2, %v131_v53  ;;  %v261_v4 = vmax.f32 %v197_v54, 0.0  ;;  %v262_v5 = vmax.f32 %v198_v55, 0.0 }
  0x60   :  { %v263_v6 = vmax.f32 %v199_v56, 0.0  ;;  %v264_v11 = vmax.f32 %v200_v60, 0.0  ;;  %v265_v12 = vmax.f32 %v201_v61, 0.0 }
  0x61   :  { %v266_v13 = vmax.f32 %v202_v62, 0.0 }
  0x64   :  { %v61_v45 = vld [vmem:[%s896_s0 + $0x178] sm:$0xff] }
  0x65   :  { %317 = vst [vmem:[%s899_s3 + $0x108] sm:$0xff] %v253_v34  ;;  %318 = vst [vmem:[%s899_s3 + $0x110] sm:$0xff] %v254_v35  ;;  %v132_v57 = vmul.f32 %v380_v1, %v61_v45 }
  0x66   :  { %319 = vst [vmem:[%s899_s3 + $0x118] sm:$0xff] %v255_v36  ;;  %320 = vst [vmem:[%s899_s3 + $0x120] sm:$0xff] %v256_v41 }
  0x67   :  { %321 = vst [vmem:[%s899_s3 + $0x128] sm:$0xff] %v257_v42  ;;  %322 = vst [vmem:[%s899_s3 + $0x130] sm:$0xff] %v258_v43  ;;  %v203_v7 = vadd.f32 %v385_v2, %v132_v57 }
  0x68   :  { %323 = vst [vmem:[%s899_s3 + $0x138] sm:$0xff] %v259_v46 }
  0x69   :  { %v267_v16 = vmax.f32 %v203_v7, 0.0 }
  0x6f   :  { %v62_v58 = vld [vmem:[%s896_s0 + $0x180] sm:$0xff]  ;;  %v63_v63 = vld [vmem:[%s896_s0 + $0x188] sm:$0xff]  ;;  %v64_v0 = vld [vmem:[%s896_s0 + $0x190] sm:$0xff] }
  0x70   :  { %v65_v3 = vld [vmem:[%s896_s0 + $0x198] sm:$0xff]  ;;  %v66_v8 = vld [vmem:[%s896_s0 + $0x1a0] sm:$0xff]  ;;  %v67_v9 = vld [vmem:[%s896_s0 + $0x1a8] sm:$0xff]  ;;  %v133_v14 = vmul.f32 %v380_v1, %v62_v58  ;;  %v134_v17 = vmul.f32 %v380_v1, %v63_v63  ;;  %v135_v18 = vmul.f32 %v380_v1, %v64_v0 }
  0x71   :  { %v68_v10 = vld [vmem:[%s896_s0 + $0x1b0] sm:$0xff]  ;;  %v136_v19 = vmul.f32 %v380_v1, %v65_v3  ;;  %v137_v21 = vmul.f32 %v380_v1, %v66_v8  ;;  %v138_v22 = vmul.f32 %v380_v1, %v67_v9 }
  0x72   :  { %324 = vst [vmem:[%s899_s3 + $0x140] sm:$0xff] %v260_v59  ;;  %v204_v20 = vadd.f32 %v385_v2, %v133_v14  ;;  %v139_v23 = vmul.f32 %v380_v1, %v68_v10  ;;  %v205_v24 = vadd.f32 %v385_v2, %v134_v17  ;;  %v206_v25 = vadd.f32 %v385_v2, %v135_v18 }
  0x73   :  { %v207_v26 = vadd.f32 %v385_v2, %v136_v19  ;;  %v208_v30 = vadd.f32 %v385_v2, %v137_v21  ;;  %v209_v31 = vadd.f32 %v385_v2, %v138_v22 }
  0x74   :  { %v268_v29 = vmax.f32 %v204_v20, 0.0  ;;  %v210_v32 = vadd.f32 %v385_v2, %v139_v23  ;;  %v269_v36 = vmax.f32 %v205_v24, 0.0  ;;  %v270_v37 = vmax.f32 %v206_v25, 0.0 }
  0x75   :  { %v271_v38 = vmax.f32 %v207_v26, 0.0  ;;  %v272_v43 = vmax.f32 %v208_v30, 0.0  ;;  %v273_v44 = vmax.f32 %v209_v31, 0.0 }
  0x76   :  { %v274_v45 = vmax.f32 %v210_v32, 0.0 }
  0x79   :  { %v69_v15 = vld [vmem:[%s896_s0 + $0x1b8] sm:$0xff] }
  0x7a   :  { %325 = vst [vmem:[%s899_s3 + $0x148] sm:$0xff] %v261_v4  ;;  %326 = vst [vmem:[%s899_s3 + $0x150] sm:$0xff] %v262_v5  ;;  %v140_v27 = vmul.f32 %v380_v1, %v69_v15 }
  0x7b   :  { %327 = vst [vmem:[%s899_s3 + $0x158] sm:$0xff] %v263_v6  ;;  %328 = vst [vmem:[%s899_s3 + $0x160] sm:$0xff] %v264_v11 }
  0x7c   :  { %329 = vst [vmem:[%s899_s3 + $0x168] sm:$0xff] %v265_v12  ;;  %330 = vst [vmem:[%s899_s3 + $0x170] sm:$0xff] %v266_v13  ;;  %v211_v39 = vadd.f32 %v385_v2, %v140_v27 }
  0x7d   :  { %331 = vst [vmem:[%s899_s3 + $0x178] sm:$0xff] %v267_v16 }
  0x7e   :  { %v275_v48 = vmax.f32 %v211_v39, 0.0 }
  0x84   :  { %v70_v28 = vld [vmem:[%s896_s0 + $0x1c0] sm:$0xff]  ;;  %v71_v33 = vld [vmem:[%s896_s0 + $0x1c8] sm:$0xff]  ;;  %v72_v34 = vld [vmem:[%s896_s0 + $0x1d0] sm:$0xff] }
  0x85   :  { %v73_v35 = vld [vmem:[%s896_s0 + $0x1d8] sm:$0xff]  ;;  %v74_v40 = vld [vmem:[%s896_s0 + $0x1e0] sm:$0xff]  ;;  %v75_v41 = vld [vmem:[%s896_s0 + $0x1e8] sm:$0xff]  ;;  %v141_v46 = vmul.f32 %v380_v1, %v70_v28  ;;  %v142_v49 = vmul.f32 %v380_v1, %v71_v33  ;;  %v143_v50 = vmul.f32 %v380_v1, %v72_v34 }
  0x86   :  { %v76_v42 = vld [vmem:[%s896_s0 + $0x1f0] sm:$0xff]  ;;  %v144_v51 = vmul.f32 %v380_v1, %v73_v35  ;;  %v145_v53 = vmul.f32 %v380_v1, %v74_v40  ;;  %v146_v54 = vmul.f32 %v380_v1, %v75_v41 }
  0x87   :  { %332 = vst [vmem:[%s899_s3 + $0x180] sm:$0xff] %v268_v29  ;;  %v212_v52 = vadd.f32 %v385_v2, %v141_v46  ;;  %v147_v55 = vmul.f32 %v380_v1, %v76_v42  ;;  %v213_v56 = vadd.f32 %v385_v2, %v142_v49  ;;  %v214_v57 = vadd.f32 %v385_v2, %v143_v50 }
  0x88   :  { %v215_v58 = vadd.f32 %v385_v2, %v144_v51  ;;  %v216_v61 = vadd.f32 %v385_v2, %v145_v53  ;;  %v217_v62 = vadd.f32 %v385_v2, %v146_v54 }
  0x89   :  { %v276_v60 = vmax.f32 %v212_v52, 0.0  ;;  %v218_v63 = vadd.f32 %v385_v2, %v147_v55  ;;  %v277_v0 = vmax.f32 %v213_v56, 0.0  ;;  %v278_v3 = vmax.f32 %v214_v57, 0.0 }
  0x8a   :  { %v279_v4 = vmax.f32 %v215_v58, 0.0  ;;  %v280_v6 = vmax.f32 %v216_v61, 0.0  ;;  %v281_v7 = vmax.f32 %v217_v62, 0.0 }
  0x8b   :  { %v282_v8 = vmax.f32 %v218_v63, 0.0 }
  0x8e   :  { %v77_v47 = vld [vmem:[%s896_s0 + $0x1f8] sm:$0xff] }
  0x8f   :  { %333 = vst [vmem:[%s899_s3 + $0x188] sm:$0xff] %v269_v36  ;;  %334 = vst [vmem:[%s899_s3 + $0x190] sm:$0xff] %v270_v37  ;;  %v148_v59 = vmul.f32 %v380_v1, %v77_v47 }
  0x90   :  { %335 = vst [vmem:[%s899_s3 + $0x198] sm:$0xff] %v271_v38  ;;  %336 = vst [vmem:[%s899_s3 + $0x1a0] sm:$0xff] %v272_v43 }
  0x91   :  { %337 = vst [vmem:[%s899_s3 + $0x1a8] sm:$0xff] %v273_v44  ;;  %338 = vst [vmem:[%s899_s3 + $0x1b0] sm:$0xff] %v274_v45  ;;  %v219_v5 = vadd.f32 %v385_v2, %v148_v59 }
  0x92   :  { %339 = vst [vmem:[%s899_s3 + $0x1b8] sm:$0xff] %v275_v48  ;;  %340 = vst [vmem:[%s899_s3 + $0x1c0] sm:$0xff] %v276_v60 }
  0x93   :  { %341 = vst [vmem:[%s899_s3 + $0x1c8] sm:$0xff] %v277_v0  ;;  %342 = vst [vmem:[%s899_s3 + $0x1d0] sm:$0xff] %v278_v3  ;;  %v283_v1 = vmax.f32 %v219_v5, 0.0 }
  0x94   :  { %343 = vst [vmem:[%s899_s3 + $0x1d8] sm:$0xff] %v279_v4  ;;  %344 = vst [vmem:[%s899_s3 + $0x1e0] sm:$0xff] %v280_v6 }
  0x95   :  { %345 = vst [vmem:[%s899_s3 + $0x1e8] sm:$0xff] %v281_v7  ;;  %346 = vst [vmem:[%s899_s3 + $0x1f0] sm:$0xff] %v282_v8 }
  0x96   :  { %347 = vst [vmem:[%s899_s3 + $0x1f8] sm:$0xff] %v283_v1 }

// kernel: conv_block_forward.2
= control target key start
LH: loop header
LB: loop body
LE: loop exit
PB: predicated region body
PF: predicated region fallthrough
CT: control target
= control target key end

     0   :  { %vm82_vm0 = vcmask 293888   ;;  %vm275_vm1 = vcmask 1043456   ;;  %vm930_vm2 = vcmask 1040384   ;;  %s1873_s1 = inlined_call_operand.vmem [shape: f32[36,128], index: 1, kind: input, shape index: {}]   ;;  %s1874_s0 = inlined_call_operand.vmem [shape: f32[512,36], index: 0, kind: input, shape index: {}]   ;;  %s1875_s2 = inlined_call_operand.vmem [shape: f32[512,128], index: 2, kind: output, shape index: {0}]   ;;  %s1876_s3 = inlined_call_operand.vmem [shape: f32[1,2,128], index: 3, kind: output, shape index: {1}]  }
   0x1   :  { %v77_v0 = vld [vmem:[%s1873_s1] sm:$0xff]  ;;  %v78_v1 = vld [vmem:[%s1873_s1 + $0x8] sm:$0xff]  ;;  %v79_v2 = vld [vmem:[%s1873_s1 + $0x10] sm:$0xff] }
   0x2   :  { %v1181_v3 = vpack.c.bf16 %v78_v1, %v77_v0  ;;  %v80_v4 = vld [vmem:[%s1873_s1 + $0x18] sm:$0xff]  ;;  %v13_v5 = vld [vmem:[%s1874_s0] sm:$0xff]  ;;  %v14_v8 = vld [vmem:[%s1874_s0 + $0x8] sm:$0xff] }
   0x3   :  { %v1185_v6 = vpack.c.bf16 %v80_v4, %v79_v2  ;;  %1085 = vmatprep.mubr.msk.f32.mxu0 %vm82_vm0, %v13_v5  ;;  %v81_v7 = vld [vmem:[%s1873_s1 + $0x20] sm:$0xf]  ;;  %v15_v9 = vld [vmem:[%s1874_s0 + $0x10] sm:$0xff]  ;;  %v46_v11 = vld [vmem:[%s1874_s0 + $0x108] sm:$0xff] }
   0x4   :  { %1182 = vmatprep.subr.bf16.mxu0 %v1181_v3  ;;  %1189 = vmatprep.subr.bf16.mxu1 %v1181_v3  ;;  %v45_v10 = vld [vmem:[%s1874_s0 + $0x100] sm:$0xff]  ;;  %v47_v12 = vld [vmem:[%s1874_s0 + $0x110] sm:$0xff]  ;;  %v16_v13 = vld [vmem:[%s1874_s0 + $0x18] sm:$0xff] }
   0x5   :  { %1184 = vmatpush3.bf16.msra.mxu0 %v1181_v3  ;;  %1192 = vmatpush3.bf16.msra.mxu1 %v1181_v3  ;;  %v17_v14 = vld [vmem:[%s1874_s0 + $0x20] sm:$0xff]  ;;  %v48_v15 = vld [vmem:[%s1874_s0 + $0x118] sm:$0xff]  ;;  %v18_v17 = vld [vmem:[%s1874_s0 + $0x28] sm:$0xff] }
   0x6   :  { %1186 = vmatprep.subr.bf16.mxu0 %v1185_v6  ;;  %1190 = vmatprep.subr.bf16.mxu1 %v1185_v6  ;;  %v49_v16 = vld [vmem:[%s1874_s0 + $0x120] sm:$0xff]  ;;  %v19_v18 = vld [vmem:[%s1874_s0 + $0x30] sm:$0xff]  ;;  %v50_v19 = vld [vmem:[%s1874_s0 + $0x128] sm:$0xff] }
   0x7   :  { %1133 = vmatprep.mubr.msk.f32.mxu1 %vm82_vm0, %v45_v10  ;;  %v51_v20 = vld [vmem:[%s1874_s0 + $0x130] sm:$0xff]  ;;  %v20_v21 = vld [vmem:[%s1874_s0 + $0x38] sm:$0xff]  ;;  %v21_v22 = vld [vmem:[%s1874_s0 + $0x40] sm:$0xff] }
   0x8   :  { %v52_v23 = vld [vmem:[%s1874_s0 + $0x138] sm:$0xff]  ;;  %v53_v24 = vld [vmem:[%s1874_s0 + $0x140] sm:$0xff]  ;;  %v22_v25 = vld [vmem:[%s1874_s0 + $0x48] sm:$0xff] }
   0x9   :  { %1188 = vmatpush3.bf16.msra.mxu0 %v1185_v6  ;;  %1193 = vmatpush3.bf16.msra.mxu1 %v1185_v6  ;;  %v23_v26 = vld [vmem:[%s1874_s0 + $0x50] sm:$0xff]  ;;  %v54_v27 = vld [vmem:[%s1874_s0 + $0x148] sm:$0xff]  ;;  %v24_v29 = vld [vmem:[%s1874_s0 + $0x58] sm:$0xff] }
   0xa   :  { %1083 = vmatprep.subr.msk.mxu0 %vm275_vm1, %v81_v7  ;;  %1191 = vmatprep.subr.msk.mxu1 %vm275_vm1, %v81_v7  ;;  %v55_v28 = vld [vmem:[%s1874_s0 + $0x150] sm:$0xff]  ;;  %v25_v30 = vld [vmem:[%s1874_s0 + $0x60] sm:$0xff]  ;;  %v56_v31 = vld [vmem:[%s1874_s0 + $0x158] sm:$0xff] }
   0xb   :  { %v57_v32 = vld [vmem:[%s1874_s0 + $0x160] sm:$0xff]  ;;  %v26_v33 = vld [vmem:[%s1874_s0 + $0x68] sm:$0xff]  ;;  %v27_v34 = vld [vmem:[%s1874_s0 + $0x70] sm:$0xff] }
   0xc   :  { %v58_v35 = vld [vmem:[%s1874_s0 + $0x168] sm:$0xff]  ;;  %v59_v36 = vld [vmem:[%s1874_s0 + $0x170] sm:$0xff]  ;;  %v28_v37 = vld [vmem:[%s1874_s0 + $0x78] sm:$0xff] }
   0xd   :  { %1084 = vmatpush3.msk.msra.mxu0 %vm275_vm1, %v81_v7  ;;  %1194 = vmatpush3.msk.msra.mxu1 %vm275_vm1, %v81_v7  ;;  %v29_v38 = vld [vmem:[%s1874_s0 + $0x80] sm:$0xff]  ;;  %v60_v39 = vld [vmem:[%s1874_s0 + $0x178] sm:$0xff]  ;;  %v30_v41 = vld [vmem:[%s1874_s0 + $0x88] sm:$0xff] }
   0xe   :  { %1086 = vmatmul.mubr.msk.f32.vlgmr.msra.gmra.mrb[0].mxu0 %vm82_vm0, %v14_v8  ;;  %1134 = vmatmul.mubr.msk.f32.vlgmr.msra.gmra.mrb[0].mxu1 %vm82_vm0, %v46_v11  ;;  %v61_v40 = vld [vmem:[%s1874_s0 + $0x180] sm:$0xff]  ;;  %v31_v42 = vld [vmem:[%s1874_s0 + $0x90] sm:$0xff]  ;;  %v62_v43 = vld [vmem:[%s1874_s0 + $0x188] sm:$0xff] }
   0xf   :  { %1088 = vmatprep.mubr.msk.f32.mxu0 %vm82_vm0, %v15_v9  ;;  %1136 = vmatprep.mubr.msk.f32.mxu1 %vm82_vm0, %v47_v12  ;;  %v63_v44 = vld [vmem:[%s1874_s0 + $0x190] sm:$0xff]  ;;  %v32_v45 = vld [vmem:[%s1874_s0 + $0x98] sm:$0xff]  ;;  %v33_v46 = vld [vmem:[%s1874_s0 + $0xa0] sm:$0xff] }
  0x10   :  { %v64_v47 = vld [vmem:[%s1874_s0 + $0x198] sm:$0xff]  ;;  %v65_v48 = vld [vmem:[%s1874_s0 + $0x1a0] sm:$0xff]  ;;  %v34_v49 = vld [vmem:[%s1874_s0 + $0xa8] sm:$0xff] }
  0x11   :  { %v35_v50 = vld [vmem:[%s1874_s0 + $0xb0] sm:$0xff]  ;;  %v66_v51 = vld [vmem:[%s1874_s0 + $0x1a8] sm:$0xff]  ;;  %v36_v53 = vld [vmem:[%s1874_s0 + $0xb8] sm:$0xff] }
  0x12   :  { %1089 = vmatmul.mubr.msk.f32.gmra.mrb[2].mxu0 %vm82_vm0, %v16_v13  ;;  %1137 = vmatmul.mubr.msk.f32.gmra.mrb[2].mxu1 %vm82_vm0, %v48_v15  ;;  %v67_v52 = vld [vmem:[%s1874_s0 + $0x1b0] sm:$0xff]  ;;  %v37_v54 = vld [vmem:[%s1874_s0 + $0xc0] sm:$0xff]  ;;  %v68_v55 = vld [vmem:[%s1874_s0 + $0x1b8] sm:$0xff] }
  0x13   :  { %1091 = vmatprep.mubr.msk.f32.mxu0 %vm82_vm0, %v17_v14  ;;  %1139 = vmatprep.mubr.msk.f32.mxu1 %vm82_vm0, %v49_v16  ;;  %v69_v56 = vld [vmem:[%s1874_s0 + $0x1c0] sm:$0xff]  ;;  %v38_v57 = vld [vmem:[%s1874_s0 + $0xc8] sm:$0xff]  ;;  %v39_v58 = vld [vmem:[%s1874_s0 + $0xd0] sm:$0xff] }
  0x14   :  { %v70_v59 = vld [vmem:[%s1874_s0 + $0x1c8] sm:$0xff]  ;;  %v71_v60 = vld [vmem:[%s1874_s0 + $0x1d0] sm:$0xff]  ;;  %v40_v61 = vld [vmem:[%s1874_s0 + $0xd8] sm:$0xff] }
  0x15   :  { %v41_v62 = vld [vmem:[%s1874_s0 + $0xe0] sm:$0xff]  ;;  %v72_v63 = vld [vmem:[%s1874_s0 + $0x1d8] sm:$0xff]  ;;  %v42_v1 = vld [vmem:[%s1874_s0 + $0xe8] sm:$0xff] }
  0x16   :  { %1092 = vmatmul.mubr.msk.f32.gmra.mrb[4].mxu0 %vm82_vm0, %v18_v17  ;;  %1140 = vmatmul.mubr.msk.f32.gmra.mrb[4].mxu1 %vm82_vm0, %v50_v19  ;;  %v73_v0 = vld [vmem:[%s1874_s0 + $0x1e0] sm:$0xff]  ;;  %v43_v2 = vld [vmem:[%s1874_s0 + $0xf0] sm:$0xff]  ;;  %v74_v3 = vld [vmem:[%s1874_s0 + $0x1e8] sm:$0xff] }
  0x17   :  { %1094 = vmatprep.mubr.msk.f32.mxu0 %vm82_vm0, %v19_v18  ;;  %1142 = vmatprep.mubr.msk.f32.mxu1 %vm82_vm0, %v51_v20  ;;  %v75_v4 = vld [vmem:[%s1874_s0 + $0x1f0] sm:$0xff]  ;;  %v44_v5 = vld [vmem:[%s1874_s0 + $0xf8] sm:$0xff] }
  0x18   :  { %v76_v6 = vld [vmem:[%s1874_s0 + $0x1f8] sm:$0xff] }
  0x1a   :  { %1095 = vmatmul.mubr.msk.f32.gmra.mrb[6].mxu0 %vm82_vm0, %v20_v21  ;;  %1143 = vmatmul.mubr.msk.f32.gmra.mrb[6].mxu1 %vm82_vm0, %v52_v23 }
  0x1b   :  { %1097 = vmatprep.mubr.msk.f32.mxu0 %vm82_vm0, %v21_v22  ;;  %1145 = vmatprep.mubr.msk.f32.mxu1 %vm82_vm0, %v53_v24 }
  0x1e   :  { %1098 = vmatmul.mubr.msk.f32.gmra.mrb[8].mxu0 %vm82_vm0, %v22_v25  ;;  %1146 = vmatmul.mubr.msk.f32.gmra.mrb[8].mxu1 %vm82_vm0, %v54_v27 }
  0x1f   :  { %1100 = vmatprep.mubr.msk.f32.mxu0 %vm82_vm0, %v23_v26  ;;  %1148 = vmatprep.mubr.msk.f32.mxu1 %vm82_vm0, %v55_v28 }
  0x22   :  { %1101 = vmatmul.mubr.msk.f32.gmra.mrb[10].mxu0 %vm82_vm0, %v24_v29  ;;  %1149 = vmatmul.mubr.msk.f32.gmra.mrb[10].mxu1 %vm82_vm0, %v56_v31 }
  0x23   :  { %1103 = vmatprep.mubr.msk.f32.mxu0 %vm82_vm0, %v25_v30  ;;  %1151 = vmatprep.mubr.msk.f32.mxu1 %vm82_vm0, %v57_v32 }
  0x26   :  { %1104 = vmatmul.mubr.msk.f32.gmra.mrb[12].mxu0 %vm82_vm0, %v26_v33  ;;  %1152 = vmatmul.mubr.msk.f32.gmra.mrb[12].mxu1 %vm82_vm0, %v58_v35 }
  0x27   :  { %1106 = vmatprep.mubr.msk.f32.mxu0 %vm82_vm0, %v27_v34  ;;  %1154 = vmatprep.mubr.msk.f32.mxu1 %vm82_vm0, %v59_v36 }
  0x2a   :  { %1107 = vmatmul.mubr.msk.f32.gmra.mrb[14].mxu0 %vm82_vm0, %v28_v37  ;;  %1155 = vmatmul.mubr.msk.f32.gmra.mrb[14].mxu1 %vm82_vm0, %v60_v39 }
  0x2b   :  { %1109 = vmatprep.mubr.msk.f32.mxu0 %vm82_vm0, %v29_v38  ;;  %1157 = vmatprep.mubr.msk.f32.mxu1 %vm82_vm0, %v61_v40 }
  0x2e   :  { %1110 = vmatmul.mubr.msk.f32.gmra.mrb[16].mxu0 %vm82_vm0, %v30_v41  ;;  %1158 = vmatmul.mubr.msk.f32.gmra.mrb[16].mxu1 %vm82_vm0, %v62_v43 }
  0x2f   :  { %1112 = vmatprep.mubr.msk.f32.mxu0 %vm82_vm0, %v31_v42  ;;  %1160 = vmatprep.mubr.msk.f32.mxu1 %vm82_vm0, %v63_v44 }
  0x32   :  { %1113 = vmatmul.mubr.msk.f32.gmra.mrb[18].mxu0 %vm82_vm0, %v32_v45  ;;  %1161 = vmatmul.mubr.msk.f32.gmra.mrb[18].mxu1 %vm82_vm0, %v64_v47 }
  0x33   :  { %1115 = vmatprep.mubr.msk.f32.mxu0 %vm82_vm0, %v33_v46  ;;  %1163 = vmatprep.mubr.msk.f32.mxu1 %vm82_vm0, %v65_v48 }
  0x36   :  { %1116 = vmatmul.mubr.msk.f32.gmra.mrb[20].mxu0 %vm82_vm0, %v34_v49  ;;  %1164 = vmatmul.mubr.msk.f32.gmra.mrb[20].mxu1 %vm82_vm0, %v66_v51 }
  0x37   :  { %1118 = vmatprep.mubr.msk.f32.mxu0 %vm82_vm0, %v35_v50  ;;  %1166 = vmatprep.mubr.msk.f32.mxu1 %vm82_vm0, %v67_v52 }
  0x3a   :  { %1119 = vmatmul.mubr.msk.f32.gmra.mrb[22].mxu0 %vm82_vm0, %v36_v53  ;;  %1167 = vmatmul.mubr.msk.f32.gmra.mrb[22].mxu1 %vm82_vm0, %v68_v55 }
  0x3b   :  { %1121 = vmatprep.mubr.msk.f32.mxu0 %vm82_vm0, %v37_v54  ;;  %1169 = vmatprep.mubr.msk.f32.mxu1 %vm82_vm0, %v69_v56 }
  0x3e   :  { %1122 = vmatmul.mubr.msk.f32.gmra.mrb[24].mxu0 %vm82_vm0, %v38_v57  ;;  %1170 = vmatmul.mubr.msk.f32.gmra.mrb[24].mxu1 %vm82_vm0, %v70_v59 }
  0x3f   :  { %1124 = vmatprep.mubr.msk.f32.mxu0 %vm82_vm0, %v39_v58  ;;  %1172 = vmatprep.mubr.msk.f32.mxu1 %vm82_vm0, %v71_v60 }
  0x42   :  { %1125 = vmatmul.mubr.msk.f32.gmra.mrb[26].mxu0 %vm82_vm0, %v40_v61  ;;  %1173 = vmatmul.mubr.msk.f32.gmra.mrb[26].mxu1 %vm82_vm0, %v72_v63 }
  0x43   :  { %1127 = vmatprep.mubr.msk.f32.mxu0 %vm82_vm0, %v41_v62  ;;  %1175 = vmatprep.mubr.msk.f32.mxu1 %vm82_vm0, %v73_v0 }
  0x46   :  { %1128 = vmatmul.mubr.msk.f32.gmra.mrb[28].mxu0 %vm82_vm0, %v42_v1  ;;  %1176 = vmatmul.mubr.msk.f32.gmra.mrb[28].mxu1 %vm82_vm0, %v74_v3 }
  0x47   :  { %1130 = vmatprep.mubr.msk.f32.mxu0 %vm82_vm0, %v43_v2  ;;  %1178 = vmatprep.mubr.msk.f32.mxu1 %vm82_vm0, %v75_v4 }
  0x4a   :  { %1131 = vmatmul.mubr.msk.f32.gmra.mrb[30].mxu0 %vm82_vm0, %v44_v5  ;;  %1179 = vmatmul.mubr.msk.f32.gmra.mrb[30].mxu1 %vm82_vm0, %v76_v6 }
  0xe1   :  { %v1087_v7 = vpop.f32.mrb[0].mxu0  ;;  %v1489_v10 = vpop.f32.mrb[0].mxu1 }
  0xe2   :  { %665 = vst [vmem:[%s1875_s2 + $0x8] sm:$0xff] %v1087_v7  ;;  %v798_v8 = vmul.f32 %v1087_v7, %v1087_v7  ;;  %v345_v9 = vpop.f32.mrb[1].mxu0  ;;  %697 = vst [vmem:[%s1875_s2 + $0x108] sm:$0xff] %v1489_v10  ;;  %v1498_v13 = vpop.f32.mrb[1].mxu1 }
  0xe3   :  { %664 = vst [vmem:[%s1875_s2] sm:$0xff] %v345_v9  ;;  %v728_v11 = vadd.f32 %v1087_v7, %v345_v9  ;;  %v797_v12 = vmul.f32 %v345_v9, %v345_v9  ;;  %696 = vst [vmem:[%s1875_s2 + $0x100] sm:$0xff] %v1498_v13 }
  0xe5   :  { %v861_v14 = vadd.f32 %v798_v8, %v797_v12  ;;  %v1090_v15 = vpop.f32.mrb[2].mxu0  ;;  %v1507_v17 = vpop.f32.mrb[2].mxu1 }
  0xe6   :  { %667 = vst [vmem:[%s1875_s2 + $0x18] sm:$0xff] %v1090_v15  ;;  %v355_v16 = vpop.f32.mrb[3].mxu0  ;;  %699 = vst [vmem:[%s1875_s2 + $0x118] sm:$0xff] %v1507_v17  ;;  %v1516_v20 = vpop.f32.mrb[3].mxu1  ;;  %v800_v21 = vmul.f32 %v1090_v15, %v1090_v15 }
  0xe7   :  { %666 = vst [vmem:[%s1875_s2 + $0x10] sm:$0xff] %v355_v16  ;;  %v729_v18 = vadd.f32 %v728_v11, %v355_v16  ;;  %v799_v19 = vmul.f32 %v355_v16, %v355_v16  ;;  %698 = vst [vmem:[%s1875_s2 + $0x110] sm:$0xff] %v1516_v20 }
  0xe9   :  { %v862_v22 = vadd.f32 %v861_v14, %v799_v19  ;;  %v1093_v23 = vpop.f32.mrb[4].mxu0  ;;  %v730_v24 = vadd.f32 %v1090_v15, %v729_v18  ;;  %v1525_v26 = vpop.f32.mrb[4].mxu1 }
  0xea   :  { %669 = vst [vmem:[%s1875_s2 + $0x28] sm:$0xff] %v1093_v23  ;;  %v365_v25 = vpop.f32.mrb[5].mxu0  ;;  %701 = vst [vmem:[%s1875_s2 + $0x128] sm:$0xff] %v1525_v26  ;;  %v1534_v30 = vpop.f32.mrb[5].mxu1  ;;  %v802_v31 = vmul.f32 %v1093_v23, %v1093_v23 }
  0xeb   :  { %668 = vst [vmem:[%s1875_s2 + $0x20] sm:$0xff] %v365_v25  ;;  %v731_v27 = vadd.f32 %v730_v24, %v365_v25  ;;  %v801_v28 = vmul.f32 %v365_v25, %v365_v25  ;;  %v863_v29 = vadd.f32 %v862_v22, %v800_v21  ;;  %700 = vst [vmem:[%s1875_s2 + $0x120] sm:$0xff] %v1534_v30 }
  0xed   :  { %v864_v32 = vadd.f32 %v863_v29, %v801_v28  ;;  %v1096_v33 = vpop.f32.mrb[6].mxu0  ;;  %v732_v34 = vadd.f32 %v1093_v23, %v731_v27  ;;  %v1543_v36 = vpop.f32.mrb[6].mxu1 }
  0xee   :  { %671 = vst [vmem:[%s1875_s2 + $0x38] sm:$0xff] %v1096_v33  ;;  %v375_v35 = vpop.f32.mrb[7].mxu0  ;;  %703 = vst [vmem:[%s1875_s2 + $0x138] sm:$0xff] %v1543_v36  ;;  %v1552_v40 = vpop.f32.mrb[7].mxu1  ;;  %v804_v41 = vmul.f32 %v1096_v33, %v1096_v33 }
  0xef   :  { %670 = vst [vmem:[%s1875_s2 + $0x30] sm:$0xff] %v375_v35  ;;  %v733_v37 = vadd.f32 %v732_v34, %v375_v35  ;;  %v803_v38 = vmul.f32 %v375_v35, %v375_v35  ;;  %v865_v39 = vadd.f32 %v864_v32, %v802_v31  ;;  %702 = vst [vmem:[%s1875_s2 + $0x130] sm:$0xff] %v1552_v40 }
  0xf1   :  { %v866_v42 = vadd.f32 %v865_v39, %v803_v38  ;;  %v1099_v43 = vpop.f32.mrb[8].mxu0  ;;  %v734_v44 = vadd.f32 %v1096_v33, %v733_v37  ;;  %v1561_v46 = vpop.f32.mrb[8].mxu1 }
  0xf2   :  { %673 = vst [vmem:[%s1875_s2 + $0x48] sm:$0xff] %v1099_v43  ;;  %v385_v45 = vpop.f32.mrb[9].mxu0  ;;  %705 = vst [vmem:[%s1875_s2 + $0x148] sm:$0xff] %v1561_v46  ;;  %v1570_v50 = vpop.f32.mrb[9].mxu1  ;;  %v806_v51 = vmul.f32 %v1099_v43, %v1099_v43 }
  0xf3   :  { %672 = vst [vmem:[%s1875_s2 + $0x40] sm:$0xff] %v385_v45  ;;  %v735_v47 = vadd.f32 %v734_v44, %v385_v45  ;;  %v805_v48 = vmul.f32 %v385_v45, %v385_v45  ;;  %v867_v49 = vadd.f32 %v866_v42, %v804_v41  ;;  %704 = vst [vmem:[%s1875_s2 + $0x140] sm:$0xff] %v1570_v50 }
  0xf5   :  { %v868_v52 = vadd.f32 %v867_v49, %v805_v48  ;;  %v1102_v53 = vpop.f32.mrb[10].mxu0  ;;  %v736_v54 = vadd.f32 %v1099_v43, %v735_v47  ;;  %v1579_v56 = vpop.f32.mrb[10].mxu1 }
  0xf6   :  { %675 = vst [vmem:[%s1875_s2 + $0x58] sm:$0xff] %v1102_v53  ;;  %v395_v55 = vpop.f32.mrb[11].mxu0  ;;  %707 = vst [vmem:[%s1875_s2 + $0x158] sm:$0xff] %v1579_v56  ;;  %v1588_v60 = vpop.f32.mrb[11].mxu1  ;;  %v808_v61 = vmul.f32 %v1102_v53, %v1102_v53 }
  0xf7   :  { %674 = vst [vmem:[%s1875_s2 + $0x50] sm:$0xff] %v395_v55  ;;  %v737_v57 = vadd.f32 %v736_v54, %v395_v55  ;;  %v807_v58 = vmul.f32 %v395_v55, %v395_v55  ;;  %v869_v59 = vadd.f32 %v868_v52, %v806_v51  ;;  %706 = vst [vmem:[%s1875_s2 + $0x150] sm:$0xff] %v1588_v60 }
  0xf9   :  { %v870_v62 = vadd.f32 %v869_v59, %v807_v58  ;;  %v1105_v63 = vpop.f32.mrb[12].mxu0  ;;  %v738_v0 = vadd.f32 %v1102_v53, %v737_v57  ;;  %v1597_v2 = vpop.f32.mrb[12].mxu1 }
  0xfa   :  { %677 = vst [vmem:[%s1875_s2 + $0x68] sm:$0xff] %v1105_v63  ;;  %v405_v1 = vpop.f32.mrb[13].mxu0  ;;  %709 = vst [vmem:[%s1875_s2 + $0x168] sm:$0xff] %v1597_v2  ;;  %v1606_v6 = vpop.f32.mrb[13].mxu1  ;;  %v810_v7 = vmul.f32 %v1105_v63, %v1105_v63 }
  0xfb   :  { %676 = vst [vmem:[%s1875_s2 + $0x60] sm:$0xff] %v405_v1  ;;  %v739_v3 = vadd.f32 %v738_v0, %v405_v1  ;;  %v809_v4 = vmul.f32 %v405_v1, %v405_v1  ;;  %v871_v5 = vadd.f32 %v870_v62, %v808_v61  ;;  %708 = vst [vmem:[%s1875_s2 + $0x160] sm:$0xff] %v1606_v6 }
  0xfd   :  { %v872_v8 = vadd.f32 %v871_v5, %v809_v4  ;;  %v1108_v9 = vpop.f32.mrb[14].mxu0  ;;  %v740_v11 = vadd.f32 %v1105_v63, %v739_v3  ;;  %v1615_v14 = vpop.f32.mrb[14].mxu1 }
  0xfe   :  { %679 = vst [vmem:[%s1875_s2 + $0x78] sm:$0xff] %v1108_v9  ;;  %v415_v12 = vpop.f32.mrb[15].mxu0  ;;  %711 = vst [vmem:[%s1875_s2 + $0x178] sm:$0xff] %v1615_v14  ;;  %v1624_v19 = vpop.f32.mrb[15].mxu1  ;;  %v812_v21 = vmul.f32 %v1108_v9, %v1108_v9 }
  0xff   :  { %678 = vst [vmem:[%s1875_s2 + $0x70] sm:$0xff] %v415_v12  ;;  %v741_v15 = vadd.f32 %v740_v11, %v415_v12  ;;  %v811_v16 = vmul.f32 %v415_v12, %v415_v12  ;;  %v873_v18 = vadd.f32 %v872_v8, %v810_v7  ;;  %710 = vst [vmem:[%s1875_s2 + $0x170] sm:$0xff] %v1624_v19 }
 0x101   :  { %v874_v22 = vadd.f32 %v873_v18, %v811_v16  ;;  %v1111_v23 = vpop.f32.mrb[16].mxu0  ;;  %v742_v24 = vadd.f32 %v1108_v9, %v741_v15  ;;  %v1633_v27 = vpop.f32.mrb[16].mxu1 }
 0x102   :  { %681 = vst [vmem:[%s1875_s2 + $0x88] sm:$0xff] %v1111_v23  ;;  %v425_v25 = vpop.f32.mrb[17].mxu0  ;;  %713 = vst [vmem:[%s1875_s2 + $0x188] sm:$0xff] %v1633_v27  ;;  %v1642_v32 = vpop.f32.mrb[17].mxu1  ;;  %v814_v33 = vmul.f32 %v1111_v23, %v1111_v23 }
 0x103   :  { %680 = vst [vmem:[%s1875_s2 + $0x80] sm:$0xff] %v425_v25  ;;  %v743_v28 = vadd.f32 %v742_v24, %v425_v25  ;;  %v813_v29 = vmul.f32 %v425_v25, %v425_v25  ;;  %v875_v31 = vadd.f32 %v874_v22, %v812_v21  ;;  %712 = vst [vmem:[%s1875_s2 + $0x180] sm:$0xff] %v1642_v32 }
 0x105   :  { %v876_v34 = vadd.f32 %v875_v31, %v813_v29  ;;  %v1114_v35 = vpop.f32.mrb[18].mxu0  ;;  %v744_v37 = vadd.f32 %v1111_v23, %v743_v28  ;;  %v1651_v39 = vpop.f32.mrb[18].mxu1 }
 0x106   :  { %683 = vst [vmem:[%s1875_s2 + $0x98] sm:$0xff] %v1114_v35  ;;  %v435_v38 = vpop.f32.mrb[19].mxu0  ;;  %715 = vst [vmem:[%s1875_s2 + $0x198] sm:$0xff] %v1651_v39  ;;  %v1660_v44 = vpop.f32.mrb[19].mxu1  ;;  %v816_v45 = vmul.f32 %v1114_v35, %v1114_v35 }
 0x107   :  { %682 = vst [vmem:[%s1875_s2 + $0x90] sm:$0xff] %v435_v38  ;;  %v745_v41 = vadd.f32 %v744_v37, %v435_v38  ;;  %v815_v42 = vmul.f32 %v435_v38, %v435_v38  ;;  %v877_v43 = vadd.f32 %v876_v34, %v814_v33  ;;  %714 = vst [vmem:[%s1875_s2 + $0x190] sm:$0xff] %v1660_v44 }
 0x109   :  { %v878_v47 = vadd.f32 %v877_v43, %v815_v42  ;;  %v1117_v48 = vpop.f32.mrb[20].mxu0  ;;  %v746_v49 = vadd.f32 %v1114_v35, %v745_v41  ;;  %v1669_v52 = vpop.f32.mrb[20].mxu1 }
 0x10a   :  { %685 = vst [vmem:[%s1875_s2 + $0xa8] sm:$0xff] %v1117_v48  ;;  %v445_v51 = vpop.f32.mrb[21].mxu0  ;;  %717 = vst [vmem:[%s1875_s2 + $0x1a8] sm:$0xff] %v1669_v52  ;;  %v1678_v57 = vpop.f32.mrb[21].mxu1  ;;  %v818_v58 = vmul.f32 %v1117_v48, %v1117_v48 }
 0x10b   :  { %684 = vst [vmem:[%s1875_s2 + $0xa0] sm:$0xff] %v445_v51  ;;  %v747_v53 = vadd.f32 %v746_v49, %v445_v51  ;;  %v817_v54 = vmul.f32 %v445_v51, %v445_v51  ;;  %v879_v55 = vadd.f32 %v878_v47, %v816_v45  ;;  %716 = vst [vmem:[%s1875_s2 + $0x1a0] sm:$0xff] %v1678_v57 }
 0x10d   :  { %v880_v59 = vadd.f32 %v879_v55, %v817_v54  ;;  %v1120_v61 = vpop.f32.mrb[22].mxu0  ;;  %v748_v62 = vadd.f32 %v1117_v48, %v747_v53  ;;  %v1687_v0 = vpop.f32.mrb[22].mxu1 }
 0x10e   :  { %687 = vst [vmem:[%s1875_s2 + $0xb8] sm:$0xff] %v1120_v61  ;;  %v455_v63 = vpop.f32.mrb[23].mxu0  ;;  %719 = vst [vmem:[%s1875_s2 + $0x1b8] sm:$0xff] %v1687_v0  ;;  %v1696_v5 = vpop.f32.mrb[23].mxu1  ;;  %v820_v7 = vmul.f32 %v1120_v61, %v1120_v61 }
 0x10f   :  { %686 = vst [vmem:[%s1875_s2 + $0xb0] sm:$0xff] %v455_v63  ;;  %v749_v1 = vadd.f32 %v748_v62, %v455_v63  ;;  %v819_v3 = vmul.f32 %v455_v63, %v455_v63  ;;  %v881_v4 = vadd.f32 %v880_v59, %v818_v58  ;;  %718 = vst [vmem:[%s1875_s2 + $0x1b0] sm:$0xff] %v1696_v5 }
 0x111   :  { %v882_v8 = vadd.f32 %v881_v4, %v819_v3  ;;  %v1123_v9 = vpop.f32.mrb[24].mxu0  ;;  %v750_v11 = vadd.f32 %v1120_v61, %v749_v1  ;;  %v1705_v15 = vpop.f32.mrb[24].mxu1 }
 0x112   :  { %689 = vst [vmem:[%s1875_s2 + $0xc8] sm:$0xff] %v1123_v9  ;;  %v465_v12 = vpop.f32.mrb[25].mxu0  ;;  %721 = vst [vmem:[%s1875_s2 + $0x1c8] sm:$0xff] %v1705_v15  ;;  %v1714_v22 = vpop.f32.mrb[25].mxu1  ;;  %v822_v23 = vmul.f32 %v1123_v9, %v1123_v9 }
 0x113   :  { %688 = vst [vmem:[%s1875_s2 + $0xc0] sm:$0xff] %v465_v12  ;;  %v751_v16 = vadd.f32 %v750_v11, %v465_v12  ;;  %v821_v18 = vmul.f32 %v465_v12, %v465_v12  ;;  %v883_v21 = vadd.f32 %v882_v8, %v820_v7  ;;  %720 = vst [vmem:[%s1875_s2 + $0x1c0] sm:$0xff] %v1714_v22 }
 0x114   :  { %v829_v11 = vmul.f32 %v1498_v13, %v1498_v13 }
 0x115   :  { %v884_v24 = vadd.f32 %v883_v21, %v821_v18  ;;  %v1126_v25 = vpop.f32.mrb[26].mxu0  ;;  %v752_v28 = vadd.f32 %v1123_v9, %v751_v16  ;;  %v1723_v31 = vpop.f32.mrb[26].mxu1  ;;  %v830_v18 = vmul.f32 %v1489_v10, %v1489_v10 }
 0x116   :  { %691 = vst [vmem:[%s1875_s2 + $0xd8] sm:$0xff] %v1126_v25  ;;  %v475_v29 = vpop.f32.mrb[27].mxu0  ;;  %723 = vst [vmem:[%s1875_s2 + $0x1d8] sm:$0xff] %v1723_v31  ;;  %v1732_v37 = vpop.f32.mrb[27].mxu1  ;;  %v824_v38 = vmul.f32 %v1126_v25, %v1126_v25 }
 0x117   :  { %690 = vst [vmem:[%s1875_s2 + $0xd0] sm:$0xff] %v475_v29  ;;  %v753_v33 = vadd.f32 %v752_v28, %v475_v29  ;;  %v823_v34 = vmul.f32 %v475_v29, %v475_v29  ;;  %v885_v35 = vadd.f32 %v884_v24, %v822_v23  ;;  %722 = vst [vmem:[%s1875_s2 + $0x1d0] sm:$0xff] %v1732_v37 }
 0x118   :  { %v831_v24 = vmul.f32 %v1516_v20, %v1516_v20  ;;  %v832_v29 = vmul.f32 %v1507_v17, %v1507_v17 }
 0x119   :  { %v886_v41 = vadd.f32 %v885_v35, %v823_v34  ;;  %v1129_v42 = vpop.f32.mrb[28].mxu0  ;;  %v754_v43 = vadd.f32 %v1126_v25, %v753_v33  ;;  %v1741_v47 = vpop.f32.mrb[28].mxu1 }
 0x11a   :  { %693 = vst [vmem:[%s1875_s2 + $0xe8] sm:$0xff] %v1129_v42  ;;  %v485_v45 = vpop.f32.mrb[29].mxu0  ;;  %725 = vst [vmem:[%s1875_s2 + $0x1e8] sm:$0xff] %v1741_v47  ;;  %v1750_v53 = vpop.f32.mrb[29].mxu1  ;;  %v826_v54 = vmul.f32 %v1129_v42, %v1129_v42 }
 0x11b   :  { %692 = vst [vmem:[%s1875_s2 + $0xe0] sm:$0xff] %v485_v45  ;;  %v755_v48 = vadd.f32 %v754_v43, %v485_v45  ;;  %v825_v49 = vmul.f32 %v485_v45, %v485_v45  ;;  %v887_v51 = vadd.f32 %v886_v41, %v824_v38  ;;  %724 = vst [vmem:[%s1875_s2 + $0x1e0] sm:$0xff] %v1750_v53 }
 0x11d   :  { %v888_v55 = vadd.f32 %v887_v51, %v825_v49  ;;  %v1132_v58 = vpop.f32.mrb[30].mxu0  ;;  %v756_v59 = vadd.f32 %v1129_v42, %v755_v48  ;;  %v1759_v62 = vpop.f32.mrb[30].mxu1 }
 0x11e   :  { %695 = vst [vmem:[%s1875_s2 + $0xf8] sm:$0xff] %v1132_v58  ;;  %v495_v61 = vpop.f32.mrb[31].mxu0  ;;  %727 = vst [vmem:[%s1875_s2 + $0x1f8] sm:$0xff] %v1759_v62  ;;  %v1768_v4 = vpop.f32.mrb[31].mxu1  ;;  %v828_v7 = vmul.f32 %v1132_v58, %v1132_v58 }
 0x11f   :  { %694 = vst [vmem:[%s1875_s2 + $0xf0] sm:$0xff] %v495_v61  ;;  %v757_v63 = vadd.f32 %v756_v59, %v495_v61  ;;  %v827_v1 = vmul.f32 %v495_v61, %v495_v61  ;;  %v889_v3 = vadd.f32 %v888_v55, %v826_v54  ;;  %726 = vst [vmem:[%s1875_s2 + $0x1f0] sm:$0xff] %v1768_v4 }
 0x121   :  { %v758_v8 = vadd.f32 %v1132_v58, %v757_v63  ;;  %v890_v9 = vadd.f32 %v889_v3, %v827_v1 }
 0x123   :  { %v891_v12 = vadd.f32 %v890_v9, %v828_v7  ;;  %v759_v16 = vadd.f32 %v758_v8, %v1498_v13  ;;  %v833_v13 = vmul.f32 %v1534_v30, %v1534_v30 }
 0x125   :  { %v892_v21 = vadd.f32 %v891_v12, %v829_v11  ;;  %v760_v23 = vadd.f32 %v1489_v10, %v759_v16  ;;  %v834_v10 = vmul.f32 %v1525_v26, %v1525_v26 }
 0x127   :  { %v761_v25 = vadd.f32 %v760_v23, %v1516_v20  ;;  %v893_v28 = vadd.f32 %v892_v21, %v830_v18  ;;  %v835_v20 = vmul.f32 %v1552_v40, %v1552_v40 }
 0x129   :  { %v894_v33 = vadd.f32 %v893_v28, %v831_v24  ;;  %v762_v34 = vadd.f32 %v1507_v17, %v761_v25  ;;  %v836_v17 = vmul.f32 %v1543_v36, %v1543_v36 }
 0x12b   :  { %v763_v35 = vadd.f32 %v762_v34, %v1534_v30  ;;  %v895_v38 = vadd.f32 %v894_v33, %v832_v29  ;;  %v837_v30 = vmul.f32 %v1570_v50, %v1570_v50 }
 0x12d   :  { %v896_v41 = vadd.f32 %v895_v38, %v833_v13  ;;  %v764_v42 = vadd.f32 %v1525_v26, %v763_v35  ;;  %v838_v26 = vmul.f32 %v1561_v46, %v1561_v46 }
 0x12f   :  { %v765_v43 = vadd.f32 %v764_v42, %v1552_v40  ;;  %v897_v45 = vadd.f32 %v896_v41, %v834_v10  ;;  %v839_v40 = vmul.f32 %v1588_v60, %v1588_v60 }
 0x131   :  { %v898_v48 = vadd.f32 %v897_v45, %v835_v20  ;;  %v766_v49 = vadd.f32 %v1543_v36, %v765_v43  ;;  %v840_v36 = vmul.f32 %v1579_v56, %v1579_v56 }
 0x133   :  { %v767_v51 = vadd.f32 %v766_v49, %v1570_v50  ;;  %v899_v54 = vadd.f32 %v898_v48, %v836_v17  ;;  %v841_v50 = vmul.f32 %v1606_v6, %v1606_v6 }
 0x135   :  { %v900_v55 = vadd.f32 %v899_v54, %v837_v30  ;;  %v768_v58 = vadd.f32 %v1561_v46, %v767_v51  ;;  %v842_v46 = vmul.f32 %v1597_v2, %v1597_v2 }
 0x137   :  { %v769_v59 = vadd.f32 %v768_v58, %v1588_v60  ;;  %v901_v61 = vadd.f32 %v900_v55, %v838_v26  ;;  %v843_v60 = vmul.f32 %v1624_v19, %v1624_v19 }
 0x139   :  { %v902_v63 = vadd.f32 %v901_v61, %v839_v40  ;;  %v770_v1 = vadd.f32 %v1579_v56, %v769_v59  ;;  %v844_v56 = vmul.f32 %v1615_v14, %v1615_v14 }
 0x13b   :  { %v771_v3 = vadd.f32 %v770_v1, %v1606_v6  ;;  %v903_v7 = vadd.f32 %v902_v63, %v840_v36  ;;  %v845_v6 = vmul.f32 %v1642_v32, %v1642_v32 }
 0x13d   :  { %v904_v8 = vadd.f32 %v903_v7, %v841_v50  ;;  %v772_v9 = vadd.f32 %v1597_v2, %v771_v3  ;;  %v846_v2 = vmul.f32 %v1633_v27, %v1633_v27 }
 0x13f   :  { %v773_v11 = vadd.f32 %v772_v9, %v1624_v19  ;;  %v905_v12 = vadd.f32 %v904_v8, %v842_v46  ;;  %v847_v19 = vmul.f32 %v1660_v44, %v1660_v44 }
 0x141   :  { %v906_v16 = vadd.f32 %v905_v12, %v843_v60  ;;  %v774_v18 = vadd.f32 %v1615_v14, %v773_v11  ;;  %v848_v14 = vmul.f32 %v1651_v39, %v1651_v39 }
 0x143   :  { %v775_v21 = vadd.f32 %v774_v18, %v1642_v32  ;;  %v907_v23 = vadd.f32 %v906_v16, %v844_v56  ;;  %v849_v32 = vmul.f32 %v1678_v57, %v1678_v57 }
 0x145   :  { %v908_v24 = vadd.f32 %v907_v23, %v845_v6  ;;  %v776_v25 = vadd.f32 %v1633_v27, %v775_v21  ;;  %v850_v27 = vmul.f32 %v1669_v52, %v1669_v52 }
 0x147   :  { %v777_v28 = vadd.f32 %v776_v25, %v1660_v44  ;;  %v909_v29 = vadd.f32 %v908_v24, %v846_v2  ;;  %v851_v44 = vmul.f32 %v1696_v5, %v1696_v5 }
 0x149   :  { %v910_v33 = vadd.f32 %v909_v29, %v847_v19  ;;  %v778_v34 = vadd.f32 %v1651_v39, %v777_v28  ;;  %v852_v39 = vmul.f32 %v1687_v0, %v1687_v0 }
 0x14b   :  { %v779_v13 = vadd.f32 %v778_v34, %v1678_v57  ;;  %v911_v35 = vadd.f32 %v910_v33, %v848_v14  ;;  %v853_v57 = vmul.f32 %v1714_v22, %v1714_v22 }
 0x14d   :  { %v912_v38 = vadd.f32 %v911_v35, %v849_v32  ;;  %v780_v10 = vadd.f32 %v1669_v52, %v779_v13  ;;  %v854_v52 = vmul.f32 %v1705_v15, %v1705_v15 }
 0x14f   :  { %v781_v41 = vadd.f32 %v780_v10, %v1696_v5  ;;  %v913_v42 = vadd.f32 %v912_v38, %v850_v27  ;;  %v855_v5 = vmul.f32 %v1732_v37, %v1732_v37 }
 0x151   :  { %v914_v20 = vadd.f32 %v913_v42, %v851_v44  ;;  %v782_v43 = vadd.f32 %v1687_v0, %v781_v41  ;;  %v856_v0 = vmul.f32 %v1723_v31, %v1723_v31 }
 0x153   :  { %v783_v45 = vadd.f32 %v782_v43, %v1714_v22  ;;  %v915_v17 = vadd.f32 %v914_v20, %v852_v39  ;;  %v857_v22 = vmul.f32 %v1750_v53, %v1750_v53 }
 0x155   :  { %v916_v48 = vadd.f32 %v915_v17, %v853_v57  ;;  %v784_v49 = vadd.f32 %v1705_v15, %v783_v45  ;;  %v858_v15 = vmul.f32 %v1741_v47, %v1741_v47 }
 0x157   :  { %v785_v30 = vadd.f32 %v784_v49, %v1732_v37  ;;  %v917_v51 = vadd.f32 %v916_v48, %v854_v52  ;;  %v859_v37 = vmul.f32 %v1768_v4, %v1768_v4 }
 0x159   :  { %v918_v54 = vadd.f32 %v917_v51, %v855_v5  ;;  %v786_v26 = vadd.f32 %v1723_v31, %v785_v30  ;;  %v860_v31 = vmul.f32 %v1759_v62, %v1759_v62 }
 0x15b   :  { %v787_v55 = vadd.f32 %v786_v26, %v1750_v53  ;;  %v919_v58 = vadd.f32 %v918_v54, %v856_v0 }
 0x15d   :  { %v920_v40 = vadd.f32 %v919_v58, %v857_v22  ;;  %v788_v59 = vadd.f32 %v1741_v47, %v787_v55 }
 0x15f   :  { %v789_v61 = vadd.f32 %v788_v59, %v1768_v4  ;;  %v921_v36 = vadd.f32 %v920_v40, %v858_v15 }
 0x161   :  { %v790_v63 = vadd.f32 %v1759_v62, %v789_v61  ;;  %v922_v1 = vadd.f32 %v921_v36, %v859_v37 }
 0x163   :  { %v791_v53 = vrot.slane %v790_v63, 4  ;;  %v923_v50 = vadd.f32 %v922_v1, %v860_v31 }
 0x165   :  { %v792_v3 = vadd.f32 %v791_v53, %v790_v63  ;;  %v924_v7 = vrot.slane %v923_v50, 4 }
 0x167   :  { %v793_v46 = vrot.slane %v792_v3, 2  ;;  %v925_v8 = vadd.f32 %v924_v7, %v923_v50 }
 0x169   :  { %v794_v9 = vadd.f32 %v793_v46, %v792_v3  ;;  %v926_v47 = vrot.slane %v925_v8, 2 }
 0x16b   :  { %v795_v60 = vrot.slane %v794_v9, 1  ;;  %v927_v11 = vadd.f32 %v926_v47, %v925_v8 }
 0x16d   :  { %v928_v12 = vrot.slane %v927_v11, 1  ;;  %v796_v4 = vadd.f32 %v795_v60, %v794_v9 }
 0x16f   :  { %v929_v56 = vadd.f32 %v928_v12, %v927_v11 }
 0x171   :  { %v931_v16 = vsel %vm930_vm2, %v796_v4, %v929_v56 }
 0x172   :  { %932 = vst [vmem:[%s1876_s3] sm:$0x3] %v931_v16 }

</bundles_post_ra>
